<compile_context>
chip_gen: v5e
topology: v5e:2x2
jax: 0.10.0
libtpu: 0.0.40
codegen_flags: <defaults>
</compile_context>

<pallas_src>
import functools

import jax
import jax.numpy as jnp
from jax import lax
from jax.experimental import pallas as pl
from jax.experimental.pallas import tpu as pltpu


def _round_up(x, m):
    return (x + m - 1) // m * m


def maspool_kernel(x_ref, m_ref, w_ref, b_ref, xo_ref, mo_ref,
                   *, tap_starts, pool_starts):
    # x_ref:  (1, C, 4*lp_pad)   phase-packed input   (channel-major, lanes = spatial)
    # m_ref:  (1, 1, 4*lp_pad)   phase-packed mask
    # w_ref:  (C+1, 9*(C+1))     block weight: rows 0..C-1 = conv W, row C = mask-count
    # b_ref:  (C, 1)             bias
    # xo_ref: (1, C, q_pad)      conv output (flat spatial, lane padded)
    # mo_ref: (1, 1, q_pad)      maxpooled mask (flat spatial, lane padded)
    C = x_ref.shape[1]
    q_pad = xo_ref.shape[2]

    x = x_ref[0]                                    # (C, 4*lp_pad)
    m = m_ref[0]                                    # (1, 4*lp_pad)
    xm = x * m                                      # mask applied in-kernel (VPU)
    xmm = jnp.concatenate([xm, m], axis=0)          # (C+1, 4*lp_pad)

    # im2col: each 3x3 / stride-2 / pad-1 tap is ONE contiguous lane slice of the
    # phase-packed layout; stack the 9 taps along the contraction axis.
    rhs = jnp.concatenate([xmm[:, s:s + q_pad] for s in tap_starts], axis=0)  # (9*(C+1), q_pad)

    # Single MXU matmul: rows 0..C-1 -> conv(x*m, W); row C -> mask-count conv mc.
    yf = jnp.dot(w_ref[...], rhs, preferred_element_type=jnp.float32)         # (C+1, q_pad)
    y, mc = yf[:C], yf[C:C + 1]
    # Exact divide keeps the 1e-4 check; pl.reciprocal(..., approx=True) would
    # move it to the EUP at ~2^-12 rel error if the tolerance is relaxed.
    inv = 1.0 / jnp.maximum(mc, 1e-5)
    xo_ref[0] = (y * inv + b_ref[...]).astype(xo_ref.dtype)

    # 2x2 / stride-2 maxpool of the mask = elementwise max of its 4 phase images (VPU only).
    mp = m[:, pool_starts[0]:pool_starts[0] + q_pad]
    for s in pool_starts[1:]:
        mp = jnp.maximum(mp, m[:, s:s + q_pad])
    mo_ref[0] = mp.astype(mo_ref.dtype)


def _phase_pack(t, lp_pad):
    """(N,K,H,W) -> (N,K,4*lp_pad): even/odd row/col phases, zero-haloed top/left,
    flattened row-major and lane-padded, concatenated along the lane axis."""
    N, K, H, W = t.shape
    H2, W2 = H // 2, W // 2
    lp_raw = (H2 + 1) * (W2 + 1)
    slabs = []
    for r in (0, 1):
        for c in (0, 1):
            p = t[:, :, r::2, c::2]                                   # (N,K,H2,W2)
            p = jnp.pad(p, ((0, 0), (0, 0), (1, 0), (1, 0)))          # zero halo
            p = p.reshape(N, K, lp_raw)
            p = jnp.pad(p, ((0, 0), (0, 0), (0, lp_pad - lp_raw)))
            slabs.append(p)
    return jnp.concatenate(slabs, axis=-1)


@jax.jit
def maspool_forward(x, m, w, b):
    """MASPool forward. x:(N,C,H,W), m:(N,1,H,W), w:(C,C,3,3) OIHW, b:(C,).
    Returns (y, m_pool) in NCHW: y:(N,C,H//2,W//2), m_pool:(N,1,H//2,W//2)."""
    N, C, H, W = x.shape
    assert H % 2 == 0 and W % 2 == 0, "MASPool kernel assumes even H, W"
    H2, W2 = H // 2, W // 2

    lane = 128
    L = H2 * (W2 + 1)                                 # flat output incl. 1 junk col/row
    q_pad = _round_up(L, lane)                        # lane-dense output / matmul N dim
    lp_raw = (H2 + 1) * (W2 + 1)
    lp_pad = _round_up(max(lp_raw, W2 + 2 + q_pad), lane)

    # Static lane offsets: conv taps (dy,dx) and the 4 maxpool corners.
    tap_starts = []
    for dy in range(3):
        for dx in range(3):
            q = (0 if dy == 1 else 2) + (0 if dx == 1 else 1)   # phase index (row,col parity)
            r0 = 0 if dy == 0 else 1
            c0 = 0 if dx == 0 else 1
            tap_starts.append(q * lp_pad + r0 * (W2 + 1) + c0)
    tap_starts = tuple(tap_starts)
    pool_starts = tuple(q * lp_pad + (W2 + 1) + 1 for q in range(4))

    # Layout plumbing (pure data movement, O(input size)): phase-packed x and m.
    xp = _phase_pack(x, lp_pad)                       # (N, C, 4*lp_pad)
    mp_in = _phase_pack(m, lp_pad)                    # (N, 1, 4*lp_pad)

    # Weight: OIHW (C,C,3,3) -> block matrix (C+1, 9*(C+1)); row C = all-ones mask-count conv.
    wt = jnp.transpose(w, (2, 3, 0, 1)).reshape(9, C, C).astype(jnp.float32)
    wpad = jnp.pad(wt, ((0, 0), (0, 1), (0, 1)))
    wpad = wpad.at[:, C, C].set(1.0)
    wfull = jnp.transpose(wpad, (1, 0, 2)).reshape(C + 1, 9 * (C + 1))
    bc = b.reshape(C, 1).astype(jnp.float32)

    flops = int(N * (2 * (C + 1) * 9 * (C + 1) * q_pad        # single matmul
                     + 2 * C * 4 * lp_pad                     # x*m
                     + 4 * (C + 1) * q_pad + 3 * q_pad))      # normalize/bias + maxpool
    bytes_accessed = int(4 * (N * (C + 1) * 4 * lp_pad + (C + 1) * 9 * (C + 1) + C
                              + N * (C + 1) * q_pad))
    resident = 4 * (2 * (C + 1) * 4 * lp_pad                  # dbl-buffered x + m blocks
                    + 2 * ((C + 1) * 9 * (C + 1) + C)         # tiny constants
                    + 2 * (C + 1) * q_pad)                    # dbl-buffered outputs
    vmem_limit = int(min(64 * 1024 * 1024, max(16 * 1024 * 1024, 6 * resident)))

    xo, mo = pl.pallas_call(
        functools.partial(maspool_kernel, tap_starts=tap_starts, pool_starts=pool_starts),
        out_shape=(jax.ShapeDtypeStruct((N, C, q_pad), x.dtype),
                   jax.ShapeDtypeStruct((N, 1, q_pad), m.dtype)),
        grid_spec=pltpu.PrefetchScalarGridSpec(
            num_scalar_prefetch=0,
            grid=(N,),
            in_specs=[
                pl.BlockSpec((1, C, 4 * lp_pad), lambda n: (n, 0, 0)),
                pl.BlockSpec((1, 1, 4 * lp_pad), lambda n: (n, 0, 0)),
                pl.BlockSpec((C + 1, 9 * (C + 1)), lambda n: (0, 0)),
                pl.BlockSpec((C, 1), lambda n: (0, 0)),
            ],
            out_specs=[
                pl.BlockSpec((1, C, q_pad), lambda n: (n, 0, 0)),
                pl.BlockSpec((1, 1, q_pad), lambda n: (n, 0, 0)),
            ],
        ),
        compiler_params=pltpu.CompilerParams(
            dimension_semantics=("parallel",),
            vmem_limit_bytes=vmem_limit),
        cost_estimate=pl.CostEstimate(flops=flops, transcendentals=0,
                                      bytes_accessed=bytes_accessed),
    )(xp, mp_in, wfull, bc)

    # Strip the per-row junk column and the lane padding (pure layout plumbing).
    y = xo[:, :, :L].reshape(N, C, H2, W2 + 1)[:, :, :, :W2]
    m_pool = mo[:, :, :L].reshape(N, 1, H2, W2 + 1)[:, :, :, :W2]
    return y, m_pool


def reference_forward(x, m, w, b):
    """Plain-JAX mirror of MASPool.forward (NCHW / OIHW)."""
    dn = ("NCHW", "OIHW", "NCHW")
    xm = x * m
    y = lax.conv_general_dilated(xm, w, (2, 2), [(1, 1), (1, 1)],
                                 dimension_numbers=dn)
    ones = jnp.ones((1, 1, 3, 3), m.dtype)
    mc = lax.conv_general_dilated(m, ones, (2, 2), [(1, 1), (1, 1)],
                                  dimension_numbers=dn)
    y = y * (1.0 / jnp.maximum(mc, 1e-5)) + b.reshape(1, -1, 1, 1)
    N, _, H, W = m.shape
    m_pool = m.reshape(N, 1, H // 2, 2, W // 2, 2).max(axis=(3, 5))
    return y, m_pool


if __name__ == "__main__":
    key = jax.random.PRNGKey(0)
    kx, km, kw, kb = jax.random.split(key, 4)

    N, C, H, W = 2, 4, 16, 16
    x = jax.random.normal(kx, (N, C, H, W), jnp.float32)
    m = (jax.random.uniform(km, (N, 1, H, W)) > 0.3).astype(jnp.float32)  # binary mask
    w = 0.1 * jax.random.normal(kw, (C, C, 3, 3), jnp.float32)            # OIHW
    b = 0.1 * jax.random.normal(kb, (C,), jnp.float32)

    y, m_pool = maspool_forward(x, m, w, b)
    y, m_pool = jax.block_until_ready((y, m_pool))

    y_ref, m_ref = reference_forward(x, m, w, b)
    assert y.shape == (N, C, H // 2, W // 2)
    assert m_pool.shape == (N, 1, H // 2, W // 2)
    assert jnp.allclose(y, y_ref, atol=1e-4, rtol=1e-4), "conv output mismatch"
    assert jnp.allclose(m_pool, m_ref, atol=1e-6), "maxpool mask mismatch"

    print("KERNEL_OK")
</pallas_src>

<mosaic_0001>
module attributes {stable_mosaic.version = 11 : i64} {
  func.func @maspool_kernel(%arg0: i32, %arg1: memref<1x4x1024xf32, #tpu.memory_space<vmem>>, %arg2: memref<1x1x1024xf32, #tpu.memory_space<vmem>>, %arg3: memref<5x45xf32, #tpu.memory_space<vmem>>, %arg4: memref<4x1xf32, #tpu.memory_space<vmem>>, %arg5: memref<1x4x128xf32, #tpu.memory_space<vmem>>, %arg6: memref<1x1x128xf32, #tpu.memory_space<vmem>>) attributes {dimension_semantics = [#tpu.dimension_semantics<parallel>], iteration_bounds = array<i64: 2>, scalar_prefetch = 0 : i64, scratch_operands = 0 : i64, tpu.core_type = #tpu.core_type<tc>, window_params = [{transform_indices = @transform_0, window_bounds = array<i64: 1, 4, 1024>}, {transform_indices = @transform_1, window_bounds = array<i64: 1, 1, 1024>}, {pipeline_mode = #tpu.pipeline_mode<synchronous>, transform_indices = @transform_2, window_bounds = array<i64: 5, 45>}, {pipeline_mode = #tpu.pipeline_mode<synchronous>, transform_indices = @transform_3, window_bounds = array<i64: 4, 1>}, {transform_indices = @transform_4, window_bounds = array<i64: 1, 4, 128>}, {transform_indices = @transform_5, window_bounds = array<i64: 1, 1, 128>}]} {
    %c0 = arith.constant 0 : index
    %c0_0 = arith.constant 0 : index
    %c0_1 = arith.constant 0 : index
    %0 = vector.load %arg1[%c0, %c0_0, %c0_1] : memref<1x4x1024xf32, #tpu.memory_space<vmem>>, vector<1x4x1024xf32>
    %1 = vector.shape_cast %0 : vector<1x4x1024xf32> to vector<4x1024xf32>
    %c0_2 = arith.constant 0 : index
    %c0_3 = arith.constant 0 : index
    %c0_4 = arith.constant 0 : index
    %2 = vector.load %arg2[%c0_2, %c0_3, %c0_4] : memref<1x1x1024xf32, #tpu.memory_space<vmem>>, vector<1x1x1024xf32>
    %3 = vector.shape_cast %2 : vector<1x1x1024xf32> to vector<1x1024xf32>
    %4 = vector.broadcast %3 : vector<1x1024xf32> to vector<4x1024xf32>
    %5 = arith.mulf %1, %4 : vector<4x1024xf32>
    %6 = tpu.concatenate %5, %3 in 0 : vector<4x1024xf32>, vector<1x1024xf32> -> vector<5x1024xf32>
    %7 = vector.extract_strided_slice %6 {offsets = [0, 768], sizes = [5, 128], strides = [1, 1]} : vector<5x1024xf32> to vector<5x128xf32>
    %8 = vector.extract_strided_slice %6 {offsets = [0, 513], sizes = [5, 128], strides = [1, 1]} : vector<5x1024xf32> to vector<5x128xf32>
    %9 = vector.extract_strided_slice %6 {offsets = [0, 769], sizes = [5, 128], strides = [1, 1]} : vector<5x1024xf32> to vector<5x128xf32>
    %10 = vector.extract_strided_slice %6 {offsets = [0, 265], sizes = [5, 128], strides = [1, 1]} : vector<5x1024xf32> to vector<5x128xf32>
    %11 = vector.extract_strided_slice %6 {offsets = [0, 10], sizes = [5, 128], strides = [1, 1]} : vector<5x1024xf32> to vector<5x128xf32>
    %12 = vector.extract_strided_slice %6 {offsets = [0, 266], sizes = [5, 128], strides = [1, 1]} : vector<5x1024xf32> to vector<5x128xf32>
    %13 = vector.extract_strided_slice %6 {offsets = [0, 777], sizes = [5, 128], strides = [1, 1]} : vector<5x1024xf32> to vector<5x128xf32>
    %14 = vector.extract_strided_slice %6 {offsets = [0, 522], sizes = [5, 128], strides = [1, 1]} : vector<5x1024xf32> to vector<5x128xf32>
    %15 = vector.extract_strided_slice %6 {offsets = [0, 778], sizes = [5, 128], strides = [1, 1]} : vector<5x1024xf32> to vector<5x128xf32>
    %16 = tpu.concatenate %7, %8, %9, %10, %11, %12, %13, %14, %15 in 0 : vector<5x128xf32>, vector<5x128xf32>, vector<5x128xf32>, vector<5x128xf32>, vector<5x128xf32>, vector<5x128xf32>, vector<5x128xf32>, vector<5x128xf32>, vector<5x128xf32> -> vector<45x128xf32>
    %c0_5 = arith.constant 0 : index
    %c0_6 = arith.constant 0 : index
    %17 = vector.load %arg3[%c0_5, %c0_6] : memref<5x45xf32, #tpu.memory_space<vmem>>, vector<5x45xf32>
    %cst = arith.constant dense<0.000000e+00> : vector<5x128xf32>
    %18 = tpu.matmul %17, %16, %cst {dimension_numbers = #tpu.dot_dimension_numbers<[1], [0], [0], [1], [0, 0, 1, 1], [], []>} : vector<5x45xf32>, vector<45x128xf32>, vector<5x128xf32> -> vector<5x128xf32>
    %19 = vector.extract_strided_slice %18 {offsets = [0, 0], sizes = [4, 128], strides = [1, 1]} : vector<5x128xf32> to vector<4x128xf32>
    %20 = vector.extract_strided_slice %18 {offsets = [4, 0], sizes = [1, 128], strides = [1, 1]} : vector<5x128xf32> to vector<1x128xf32>
    %cst_7 = arith.constant 9.99999974E-6 : f32
    %21 = vector.broadcast %cst_7 : f32 to vector<1x128xf32>
    %22 = arith.maximumf %20, %21 : vector<1x128xf32>
    %cst_8 = arith.constant 1.000000e+00 : f32
    %23 = vector.broadcast %cst_8 : f32 to vector<1x128xf32>
    %24 = arith.divf %23, %22 : vector<1x128xf32>
    %25 = vector.broadcast %24 : vector<1x128xf32> to vector<4x128xf32>
    %26 = arith.mulf %19, %25 : vector<4x128xf32>
    %c0_9 = arith.constant 0 : index
    %c0_10 = arith.constant 0 : index
    %27 = vector.load %arg4[%c0_9, %c0_10] : memref<4x1xf32, #tpu.memory_space<vmem>>, vector<4x1xf32>
    %28 = vector.broadcast %27 : vector<4x1xf32> to vector<4x128xf32>
    %29 = arith.addf %26, %28 : vector<4x128xf32>
    %c0_11 = arith.constant 0 : index
    %c0_12 = arith.constant 0 : index
    %c0_13 = arith.constant 0 : index
    %30 = vector.load %arg5[%c0_11, %c0_12, %c0_13] : memref<1x4x128xf32, #tpu.memory_space<vmem>>, vector<1x4x128xf32>
    %31 = vector.shape_cast %30 : vector<1x4x128xf32> to vector<4x128xf32>
    %32 = vector.shape_cast %29 : vector<4x128xf32> to vector<1x4x128xf32>
    tpu.vector_store %arg5[%c0_11, %c0_12, %c0_13], %32 {strides = array<i32>} : memref<1x4x128xf32, #tpu.memory_space<vmem>>, vector<1x4x128xf32>,
    %33 = vector.extract_strided_slice %3 {offsets = [0, 10], sizes = [1, 128], strides = [1, 1]} : vector<1x1024xf32> to vector<1x128xf32>
    %34 = vector.extract_strided_slice %3 {offsets = [0, 266], sizes = [1, 128], strides = [1, 1]} : vector<1x1024xf32> to vector<1x128xf32>
    %35 = arith.maximumf %33, %34 : vector<1x128xf32>
    %36 = vector.extract_strided_slice %3 {offsets = [0, 522], sizes = [1, 128], strides = [1, 1]} : vector<1x1024xf32> to vector<1x128xf32>
    %37 = arith.maximumf %35, %36 : vector<1x128xf32>
    %38 = vector.extract_strided_slice %3 {offsets = [0, 778], sizes = [1, 128], strides = [1, 1]} : vector<1x1024xf32> to vector<1x128xf32>
    %39 = arith.maximumf %37, %38 : vector<1x128xf32>
    %c0_14 = arith.constant 0 : index
    %c0_15 = arith.constant 0 : index
    %c0_16 = arith.constant 0 : index
    %40 = vector.load %arg6[%c0_14, %c0_15, %c0_16] : memref<1x1x128xf32, #tpu.memory_space<vmem>>, vector<1x1x128xf32>
    %41 = vector.shape_cast %40 : vector<1x1x128xf32> to vector<1x128xf32>
    %42 = vector.shape_cast %39 : vector<1x128xf32> to vector<1x1x128xf32>
    tpu.vector_store %arg6[%c0_14, %c0_15, %c0_16], %42 {strides = array<i32>} : memref<1x1x128xf32, #tpu.memory_space<vmem>>, vector<1x1x128xf32>,
    return
  }
  func.func @transform_0(%arg0: i32) -> (i32, i32, i32) {
    %c0_i32 = arith.constant 0 : i32
    %c0_i32_0 = arith.constant 0 : i32
    %c0_i32_1 = arith.constant 0 : i32
    return %arg0, %c0_i32, %c0_i32_0 : i32, i32, i32
  }
  func.func @transform_1(%arg0: i32) -> (i32, i32, i32) {
    %c0_i32 = arith.constant 0 : i32
    %c0_i32_0 = arith.constant 0 : i32
    %c0_i32_1 = arith.constant 0 : i32
    return %arg0, %c0_i32, %c0_i32_0 : i32, i32, i32
  }
  func.func @transform_2(%arg0: i32) -> (i32, i32) {
    %c0_i32 = arith.constant 0 : i32
    %c0_i32_0 = arith.constant 0 : i32
    %c0_i32_1 = arith.constant 0 : i32
    return %c0_i32, %c0_i32_0 : i32, i32
  }
  func.func @transform_3(%arg0: i32) -> (i32, i32) {
    %c0_i32 = arith.constant 0 : i32
    %c0_i32_0 = arith.constant 0 : i32
    %c0_i32_1 = arith.constant 0 : i32
    return %c0_i32, %c0_i32_0 : i32, i32
  }
  func.func @transform_4(%arg0: i32) -> (i32, i32, i32) {
    %c0_i32 = arith.constant 0 : i32
    %c0_i32_0 = arith.constant 0 : i32
    %c0_i32_1 = arith.constant 0 : i32
    return %arg0, %c0_i32, %c0_i32_0 : i32, i32, i32
  }
  func.func @transform_5(%arg0: i32) -> (i32, i32, i32) {
    %c0_i32 = arith.constant 0 : i32
    %c0_i32_0 = arith.constant 0 : i32
    %c0_i32_1 = arith.constant 0 : i32
    return %arg0, %c0_i32, %c0_i32_0 : i32, i32, i32
  }
}

</mosaic_0001>

<bundles_post_ra>
// kernel: maspool_forward.1
= control target key start
LH: loop header
LB: loop body
LE: loop exit
PB: predicated region body
PF: predicated region fallthrough
CT: control target
= control target key end

     0   :  { %s676_s18 = smov 0   ;;  %s760_s0 = inlined_call_operand.vmem [shape: f32[2,4,1024], index: 0, kind: input, shape index: {}]   ;;  %s761_s1 = inlined_call_operand.vmem [shape: f32[2,1,1024], index: 1, kind: input, shape index: {}]   ;;  %s762_s2 = inlined_call_operand.vmem [shape: f32[5,45], index: 2, kind: input, shape index: {}]   ;;  %s763_s3 = inlined_call_operand.vmem [shape: f32[4,1], index: 3, kind: input, shape index: {}]   ;;  %s764_s4 = inlined_call_operand.vmem [shape: f32[2,4,128], index: 4, kind: output, shape index: {0}]   ;;  %s765_s5 = inlined_call_operand.vmem [shape: f32[2,1,128], index: 5, kind: output, shape index: {1}]  }
   0x1 LB: > { %s570_s19 = sadd.s32 4294967295, %s640_s18   ;;  %p574_p0 = scmp.ge.s32.totalorder %s640_s18, 1  ;;  %s640_s18 = sphi %s676_s18, %s16_s18  }
   0x2   : > { %p199_p1 = scmp.lt.s32.totalorder %s640_s18, 3 }
   0x4   : > { %p200_p2 = pnand %p574_p0, %p199_p1 }
   0x5   : > { %p233_p3 = scmp.lt.s32.totalorder (!%p200_p2), %s570_s19, 1  ;;  %s642_s28 = smov (!%p200_p2), 118  }
   0x6   : > { %203 = sbr.rel (%p200_p2) target bundleno = 326 (0x146), region = 36  ;;  %s643_s29 = smov (!%p200_p2), 119  }
   0x7   : > { %s644_s30 = smov (!%p200_p2), 127  }
   0xb   : > { %s767_s19 = smov (!%p233_p3, %s570_s19), 1  ;;  %vm267_vm0 = vcmask 1043456   ;;  %v453_v63 = vld [vmem:[%s763_s3] sm:$0xf]  ;;  %vm363_vm1 = vcmask 965632   ;;  %vm395_vm2 = vcmask 1044480  }
   0xc   : > { %s583_s20 = sshll.u32 %s767_s19, 5  ;;  %s577_s21 = sshll.u32 %s767_s19, 3  ;;  %vm352_vm3 = vcmask 973824   ;;  %vm402_vm4 = vcmask 1040384   ;;  %vm406_vm5 = vcmask 1042432   ;;  %vm404_vm6 = vcmask 1045504  }
   0xd   : > { %s241_s24 = scalar_lea.vmem %s761_s1, %s577_s21  ;;  %s237_s27 = scalar_lea.vmem %s760_s0, %s583_s20  ;;  %vm331_vm7 = vcmask 1039360   ;;  %vm397_vm8 = vcmask 1041408   ;;  %vm399_vm9 = vcmask 1046528   ;;  %vm409_vm10 = vcmask 367616  }
   0xe   : > { %v694_v0 = vld [vmem:[%s241_s24] sm:$0xff]  ;;  %v252_v9 = vld [vmem:[%s237_s27 + $0x18] sm:$0xff]  ;;  %v251_v11 = vld [vmem:[%s237_s27 + $0x10] sm:$0xff]  ;;  %s248_s12 = scalar_lea.vmem %s765_s5, %s767_s19  ;;  %s578_s13 = sshll.u32 %s767_s19, 2 }
   0xf   : > { %v261_v1 = vperm.slane %v694_v0, 6  ;;  %v262_v2 = vperm.slane %v694_v0, 7  ;;  %v259_v3 = vperm.slane %v694_v0, 4  ;;  %v260_v4 = vperm.slane %v694_v0, 5  ;;  %v250_v13 = vld [vmem:[%s237_s27 + $0x8] sm:$0xff]  ;;  %v249_v15 = vld [vmem:[%s237_s27] sm:$0xff]  ;;  %s245_s16 = scalar_lea.vmem %s764_s4, %s578_s13 }
  0x10   : > { %v257_v5 = vperm.slane %v694_v0, 2  ;;  %v258_v6 = vperm.slane %v694_v0, 3  ;;  %v255_v7 = vperm.slane %v694_v0, 0  ;;  %v256_v8 = vperm.slane %v694_v0, 1 }
  0x11   : > { %v266_v10 = vrot.slane %v262_v2, 4  ;;  %v265_v12 = vrot.slane %v260_v4, 4 }
  0x12   : > { %v264_v14 = vrot.slane %v258_v6, 4  ;;  %v263_v16 = vrot.slane %v256_v8, 4 }
  0x13   : > { %v271_v17 = vsel %vm267_vm0, %v261_v1, %v266_v10  ;;  %v270_v18 = vsel %vm267_vm0, %v259_v3, %v265_v12 }
  0x14   : > { %v279_v19 = vmul.f32 %v271_v17, %v252_v9  ;;  %v278_v20 = vmul.f32 %v270_v18, %v251_v11  ;;  %v269_v21 = vsel %vm267_vm0, %v257_v5, %v264_v14  ;;  %v268_v22 = vsel %vm267_vm0, %v255_v7, %v263_v16 }
  0x15   : > { %v277_v23 = vmul.f32 %v269_v21, %v250_v13  ;;  %v276_v24 = vmul.f32 %v268_v22, %v249_v15 }
  0x16   : > { %290 = vst [vmem:[#allocation1 + $0x30] ss:$2 sm:$0xff] %v279_v19 }
  0x17   : > { %288 = vst [vmem:[#allocation1 + $0x20] ss:$2 sm:$0xff] %v278_v20 }
  0x18   : > { %286 = vst [vmem:[#allocation1 + $0x10] ss:$2 sm:$0xff] %v277_v23 }
  0x19   : > { %284 = vst [vmem:[#allocation1] ss:$2 sm:$0xff] %v276_v24 }
  0x1d   : > { %v297_v25 = vld.sshfl [vmem:[#allocation1 + $0x30] sm:$0xff pattern:$0x75316420]  ;;  %v298_v26 = vld.sshfl [vmem:[#allocation1 + $0x38] sm:$0xff pattern:$0x75316420] }
  0x1e   : > { %v709_v27 = vsel %vm267_vm0, %v297_v25, %v261_v1  ;;  %v322_v28 = vsel %vm267_vm0, %v298_v26, %v262_v2  ;;  %v295_v29 = vld.sshfl [vmem:[#allocation1 + $0x20] sm:$0xff pattern:$0x75316420]  ;;  %v296_v30 = vld.sshfl [vmem:[#allocation1 + $0x28] sm:$0xff pattern:$0x75316420] }
  0x1f   : > { %390 = vrot.lane.b32.xlu0 %v709_v27, %s642_s28  ;;  %v374_v31 = vrot.slane %v709_v27, 2  ;;  %v375_v32 = vrot.slane %v322_v28, 2  ;;  %v319_v33 = vsel %vm267_vm0, %v295_v29, %v259_v3  ;;  %v320_v34 = vsel %vm267_vm0, %v296_v30, %v260_v4  ;;  %v293_v35 = vld.sshfl [vmem:[#allocation1 + $0x10] sm:$0xff pattern:$0x75316420] }
  0x20   : > { %v294_v37 = vld.sshfl [vmem:[#allocation1 + $0x18] sm:$0xff pattern:$0x75316420]  ;;  %v291_v38 = vld.sshfl [vmem:[#allocation1] sm:$0xff pattern:$0x75316420]  ;;  %v317_v45 = vsel %vm267_vm0, %v293_v35, %v257_v5 }
  0x21   : > { %v596_v36 = vpack.i.bf16 %v375_v32, %v374_v31  ;;  %v292_v39 = vld.sshfl [vmem:[#allocation1 + $0x8] sm:$0xff pattern:$0x75316420]  ;;  %v315_v40 = vsel %vm267_vm0, %v291_v38, %v255_v7  ;;  %v382_v41 = vrot.slane %v319_v33, 5  ;;  %v383_v42 = vrot.slane %v320_v34, 5 }
  0x22   : > { %v316_v43 = vsel %vm267_vm0, %v292_v39, %v256_v8  ;;  %v357_v44 = vrot.slane %v315_v40, 4  ;;  %v318_v46 = vsel %vm267_vm0, %v294_v37, %v258_v6  ;;  %v346_v50 = vrot.slane %v317_v45, 1 }
  0x23   : > { %597 = vrot.lane.b32.xlu1 %v596_v36, %s643_s29  ;;  %v358_v47 = vrot.slane %v316_v43, 4  ;;  %v601_v49 = vpack.i.bf16 %v383_v42, %v382_v41  ;;  %v347_v51 = vrot.slane %v318_v46, 1  ;;  %v366_v52 = vrot.slane %v317_v45, 7 }
  0x24   : > { %v367_v53 = vrot.slane %v318_v46, 7  ;;  %v325_v55 = vrot.slane %v319_v33, 3  ;;  %v326_v56 = vrot.slane %v320_v34, 3  ;;  %v336_v59 = vrot.slane %v709_v27, 6  ;;  %v408_v46 = vld [vmem:[%s762_s2] sm:$0x1f] }
  0x25   : > { %v606_v48 = vpack.i.bf16 %v358_v47, %v357_v44  ;;  %v616_v54 = vpack.i.bf16 %v347_v51, %v346_v50  ;;  %v337_v60 = vrot.slane %v322_v28, 6  ;;  %v461_v1 = vrot.slane %v694_v0, 2 }
  0x26   : > { %v611_v57 = vpack.i.bf16 %v367_v53, %v366_v52  ;;  %v621_v58 = vpack.i.bf16 %v326_v56, %v325_v55  ;;  %v464_v2 = vrot.slane %v694_v0, 4  ;;  %v645_v3 = vmov 0  }
  0x27   : > { %392 = vrot.lane.b32.xlu0 %v322_v28, %s642_s28  ;;  %607 = vrot.lane.b32.xlu2 %v606_v48, %s642_s28  ;;  %v626_v61 = vpack.i.bf16 %v337_v60, %v336_v59  ;;  %v463_v4 = vmax.f32 %v694_v0, %v461_v1  ;;  %v467_v5 = vrot.slane %v694_v0, 6 }
  0x28   : > { %631 = vset.pattern.permute.xlu0 %v645_v3 }
  0x29   : > { %v466_v7 = vmax.f32 %v463_v4, %v464_v2 }
  0x2b   : > { %602 = vrot.lane.b32.xlu1 %v601_v49, %s642_s28  ;;  %v469_v8 = vmax.f32 %v466_v7, %v467_v5 }
  0x2d   : > { %v471_v11 = vperm.slane %v469_v8, 0  ;;  %v472_v12 = vperm.slane %v469_v8, 1 }
  0x2f   : > { %617 = vrot.lane.b32.xlu0 %v616_v54, %s643_s29  ;;  %612 = vrot.lane.b32.xlu2 %v611_v57, %s642_s28 }
  0x33   : > { %622 = vrot.lane.b32.xlu1 %v621_v58, %s644_s30 }
  0x37   : > { %627 = vrot.lane.b32.xlu2 %v626_v61, %s644_s30  ;;  %456 = vperm.xlu0 %631, %v453_v63  }
  0x3b   : > { %473 = vrot.lane.b32.xlu1 %v471_v11, %s642_s28 }
  0x3f   : > { %475 = vrot.lane.b32.xlu2 %v472_v12, %s642_s28 }
  0x81   : > { %v608_v62 = vpop.permute.xlu2 %607 }
  0x82   : > { %v610_v13 = vunpack.i.h.bf16 %v608_v62  ;;  %v609_v14 = vunpack.i.l.bf16 %v608_v62 }
  0x84   : > { %v364_v21 = vsel %vm363_vm1, %v609_v14, %v610_v13 }
  0x89   : > { %v613_v10 = vpop.permute.xlu2 %612 }
  0x8a   : > { %v615_v15 = vunpack.i.h.bf16 %v613_v10  ;;  %v614_v16 = vunpack.i.l.bf16 %v613_v10 }
  0x8c   : > { %v372_v22 = vsel %vm363_vm1, %v614_v16, %v615_v15 }
  0x8d   : > { %v403_v29 = vsel %vm402_vm4, %v364_v21, %v372_v22 }
  0x91   : > { %v391_v6 = vpop.permute.xlu0 %390  ;;  %v628_v25 = vpop.permute.xlu2 %627 }
  0x92   : > { %v630_v34 = vunpack.i.h.bf16 %v628_v25  ;;  %v629_v35 = vunpack.i.l.bf16 %v628_v25 }
  0x94   : > { %v342_v42 = vsel %vm331_vm7, %v629_v35, %v630_v34 }
  0x95   : > { %v598_v9 = vpop.permute.xlu1 %597 }
  0x96   : > { %v600_v18 = vunpack.i.h.bf16 %v598_v9  ;;  %v599_v19 = vunpack.i.l.bf16 %v598_v9 }
  0x98   : > { %v380_v26 = vsel %vm352_vm3, %v599_v19, %v600_v18 }
  0x99   : > { %v393_v17 = vpop.permute.xlu0 %392  ;;  %v405_v36 = vsel %vm404_vm6, %v403_v29, %v380_v26  ;;  %v476_v49 = vpop.permute.xlu2 %475 }
  0x9a   : > { %v394_v0 = vsel %vm363_vm1, %v391_v6, %v393_v17 }
  0x9b   : > { %579 = vmatpush.msk.msra.mxu0 %vm395_vm2, %v394_v0 }
  0x9d   : > { %v603_v20 = vpop.permute.xlu1 %602 }
  0x9e   : > { %v605_v23 = vunpack.i.h.bf16 %v603_v20  ;;  %v604_v24 = vunpack.i.l.bf16 %v603_v20 }
  0xa0   : > { %v388_v28 = vsel %vm363_vm1, %v604_v24, %v605_v23 }
  0xa1   : > { %v618_v30 = vpop.permute.xlu0 %617  ;;  %v407_v31 = vsel %vm406_vm5, %v380_v26, %v388_v28 }
  0xa2   : > { %v620_v32 = vunpack.i.h.bf16 %v618_v30  ;;  %v619_v33 = vunpack.i.l.bf16 %v618_v30  ;;  %426 = vmatpush.msra.mxu0 %v407_v31 }
  0xa4   : > { %427 = vmatpush.msra.mxu0 %v405_v36  ;;  %v353_v37 = vsel %vm352_vm3, %v619_v33, %v620_v32 }
  0xa5   : > { %v623_v38 = vpop.permute.xlu1 %622  ;;  %v401_v39 = vsel %vm267_vm0, %v353_v37, %v364_v21 }
  0xa6   : > { %v625_v40 = vunpack.i.h.bf16 %v623_v38  ;;  %v624_v41 = vunpack.i.l.bf16 %v623_v38  ;;  %428 = vmatpush.msra.mxu0 %v401_v39 }
  0xa8   : > { %v332_v43 = vsel %vm331_vm7, %v624_v41, %v625_v40 }
  0xa9   : > { %v398_v44 = vsel %vm397_vm8, %v332_v43, %v342_v42  ;;  %v396_v47 = vsel %vm395_vm2, %v709_v27, %v332_v43  ;;  %v457_v63 = vpop.permute.xlu0 %456 }
  0xaa   : > { %v400_v45 = vsel %vm399_vm9, %v398_v44, %v353_v37 }
  0xab   : > { %429 = vmatpush.msra.mxu0 %v400_v45 }
  0xad   : > { %430 = vmatpush.msra.mxu0 %v396_v47  ;;  %v474_v48 = vpop.permute.xlu1 %473 }
  0xae   : > { %580 = vmatmul.msk.f32.vlgmr.msra.gmra.mxu0 %vm409_vm10, %v408_v46  ;;  %v477_v50 = vsel %vm363_vm1, %v474_v48, %v476_v49 }
  0xaf   : > { %479 = vst [vmem:[%s248_s12] sm:$0x1] %v477_v50 }
 0x12b   : > { %v432_v51 = vpop.f32.mrf.mxu0 }
 0x12c   : > { %v435_v52 = vmax.f32 %v432_v51, 1e-05 }
 0x12e   : > { %632 = vrcp.f32 %v435_v52  ;;  %v447_v56 = vand.u32 2147483648, %v435_v52  ;;  %v445_v57 = vand.u32 2147483647, %v435_v52  ;;  %vm441_vm12 = vweird.f32 %v435_v52 }
 0x130   : > { %v448_v59 = vor.u32 1.1754944e-38, %v447_v56  ;;  %vm446_vm14 = vcmp.eq.f32.partialorder %v445_v57, 8.507059e+37 }
 0x134   : > { %v633_v53 = vpop.eup %632 }
 0x135   : > { %v437_v54 = vmul.f32 %v633_v53, %v435_v52  ;;  %vm442_vm11 = vweird.f32 %v633_v53 }
 0x136   : > { %vm443_vm13 = vmor %vm441_vm12, %vm442_vm11 }
 0x137   : > { %v438_v55 = vsub.f32 1.0, %v437_v54 }
 0x139   : > { %v439_v27 = vmul.f32 %v633_v53, %v438_v55 }
 0x13b   : > { %v440_v58 = vadd.f32 %v633_v53, %v439_v27 }
 0x13d   : > { %v444_v60 = vsel %vm443_vm13, %v633_v53, %v440_v58 }
 0x13e   : > { %v449_v61 = vsel %vm446_vm14, %v448_v59, %v444_v60 }
 0x13f   : > { %v451_v62 = vperm.slane %v449_v61, 4 }
 0x141   : > { %v452_v1 = vmul.f32 %v451_v62, %v432_v51 }
 0x143   : > { %v459_v2 = vadd.f32 %v457_v63, %v452_v1 }
 0x145   : > { %460 = vst [vmem:[%s245_s16] sm:$0xf] %v459_v2 }
 0x146 PF: > { %s16_s18 = sadd.s32 1, %s640_s18  }
 0x147   : > { %p13_p4 = scmp.ge.s32.totalorder %s16_s18, 4  }
 0x149   :  { %15 = sbr.rel (!%p13_p4) target bundleno = 1 (0x1), region = 84 }

</bundles_post_ra>
